<compile_context>
chip_gen: v7x
topology: tpu7x:2x2x1
jax: 0.10.0
libtpu: 0.0.40
codegen_flags: <defaults>
</compile_context>

<pallas_src>
import jax
import jax.numpy as jnp
from jax.experimental import pallas as pl
from jax.experimental.pallas import tpu as pltpu


def _round_up(a, b):
    return (a + b - 1) // b * b


def mol2spec_kernel(x_ref, w1_ref, b1_ref, w2_ref, b2_ref, wf_ref, bf_ref,
                    o_ref, acc_ref):
    """Grid = (row_tiles, n_layers); layer axis is 'arbitrary' (sequential).

    x_ref  : (TN, D)     input rows tile (fetched once per row tile)
    w1_ref : (1, D, H)   layer k: W1^T          (streamed per layer step)
    b1_ref : (1, 1, H)   layer k: b1
    w2_ref : (1, H, D)   layer k: W2^T
    b2_ref : (1, 1, D)   layer k: b2
    wf_ref : (D, P)      final Linear W^T       (constant index_map -> resident)
    bf_ref : (1, P)      final Linear bias
    o_ref  : (TN, P)     output rows tile       (written on last layer step)
    acc_ref: (TN, D) f32 activation accumulator, resident across the layer axis
    """
    k = pl.program_id(1)

    @pl.when(k == 0)
    def _init():
        acc_ref[...] = x_ref[...].astype(jnp.float32)

    h = acc_ref[...]                                                 # (TN, D) f32
    z = jnp.dot(h, w1_ref[0], preferred_element_type=jnp.float32) + b1_ref[0]
    z = z * (1.0 / (1.0 + jnp.exp(-z)))                              # SiLU (exp on EUP)
    y = jnp.dot(z, w2_ref[0], preferred_element_type=jnp.float32) + b2_ref[0]
    acc_ref[...] = h + y                                             # residual add

    @pl.when(k == pl.num_programs(1) - 1)
    def _final():
        out = jnp.dot(acc_ref[...], wf_ref[...],
                      preferred_element_type=jnp.float32) + bf_ref[...]
        o_ref[...] = out.astype(o_ref.dtype)


def _vmem_estimate_bytes(tile_n, D, H, P, itemsize=4):
    """Rough per-call VMEM footprint (double-buffered ins/outs + scratch)."""
    x_buf = 2 * tile_n * D * itemsize
    o_buf = 2 * tile_n * P * itemsize
    w1 = 2 * D * H * itemsize
    w2 = 2 * H * D * itemsize
    b1 = 2 * H * itemsize
    b2 = 2 * D * itemsize
    wf = 2 * D * P * itemsize
    bf = 2 * P * itemsize
    acc = tile_n * D * itemsize
    return x_buf + o_buf + w1 + w2 + b1 + b2 + wf + bf + acc


def mol2spec_forward(x, w1s, b1s, w2s, b2s, wf, bf, *, tile_n=256,
                     vmem_budget_bytes=40 * 1024 * 1024):
    """Fused Mol2SpecSimple forward (inference).

    x   : (N, D)  molecule vectors
    w1s : (L, D, H)  = stack of PyTorch Linear1.weight.T   (pre-transposed)
    b1s : (L, H)
    w2s : (L, H, D)  = stack of PyTorch Linear2.weight.T
    b2s : (L, D)
    wf  : (D, P)     = final Linear.weight.T
    bf  : (P,)
    Returns (N, P) float32.
    """
    x = x.astype(jnp.float32)
    N, D = x.shape
    L, D1, H = w1s.shape
    assert D1 == D and w2s.shape == (L, H, D)
    assert b1s.shape == (L, H) and b2s.shape == (L, D)
    P = wf.shape[1]
    assert wf.shape == (D, P) and bf.shape == (P,)
    assert L >= 1

    # --- choose a large, VMEM-safe row tile (multiple of 8) -----------------
    tile_n = max(8, min(int(tile_n), _round_up(N, 8)))
    tile_n = _round_up(tile_n, 8)
    while tile_n > 8 and _vmem_estimate_bytes(tile_n, D, H, P) > vmem_budget_bytes:
        tile_n = max(8, _round_up(tile_n // 2, 8))

    # --- pad N so the grid covers it exactly (tail rows are zeros, discarded)
    N_pad = _round_up(N, tile_n)
    if N_pad != N:
        x = jnp.pad(x, ((0, N_pad - N), (0, 0)))

    b1s_r = b1s.reshape(L, 1, H).astype(jnp.float32)
    b2s_r = b2s.reshape(L, 1, D).astype(jnp.float32)
    bf_r = bf.reshape(1, P).astype(jnp.float32)

    grid = (N_pad // tile_n, L)

    compiler_kwargs = dict(dimension_semantics=("parallel", "arbitrary"))
    est = _vmem_estimate_bytes(tile_n, D, H, P)
    if est > 16 * 1024 * 1024:
        # Raise the scoped VMEM limit only when the footprint actually needs it
        # (keeps headroom on v7x's 64 MiB physical VMEM).
        compiler_kwargs["vmem_limit_bytes"] = min(
            int(est * 1.25) + (2 << 20), 48 * 1024 * 1024)

    cost = pl.CostEstimate(
        flops=int(L * 4 * N_pad * D * H + 2 * N_pad * D * P),
        transcendentals=int(L * N_pad * H),
        bytes_accessed=int(4 * (N_pad * D + N_pad * P
                                + L * (D * H + H * D + H + D) + D * P + P)),
    )

    out = pl.pallas_call(
        mol2spec_kernel,
        out_shape=jax.ShapeDtypeStruct((N_pad, P), jnp.float32),
        grid_spec=pltpu.PrefetchScalarGridSpec(
            num_scalar_prefetch=0,
            grid=grid,
            in_specs=[
                pl.BlockSpec((tile_n, D), lambda i, k: (i, 0)),   # x rows tile
                pl.BlockSpec((1, D, H), lambda i, k: (k, 0, 0)),  # W1^T (layer k)
                pl.BlockSpec((1, 1, H), lambda i, k: (k, 0, 0)),  # b1   (layer k)
                pl.BlockSpec((1, H, D), lambda i, k: (k, 0, 0)),  # W2^T (layer k)
                pl.BlockSpec((1, 1, D), lambda i, k: (k, 0, 0)),  # b2   (layer k)
                pl.BlockSpec((D, P), lambda i, k: (0, 0)),        # final W^T (resident)
                pl.BlockSpec((1, P), lambda i, k: (0, 0)),        # final bias (resident)
            ],
            out_specs=pl.BlockSpec((tile_n, P), lambda i, k: (i, 0)),
            scratch_shapes=[pltpu.VMEM((tile_n, D), jnp.float32)],
        ),
        compiler_params=pltpu.CompilerParams(**compiler_kwargs),
        cost_estimate=cost,
    )(x, w1s.astype(jnp.float32), b1s_r, w2s.astype(jnp.float32), b2s_r,
      wf.astype(jnp.float32), bf_r)

    return out[:N] if N_pad != N else out


if __name__ == "__main__":
    # Small deterministic example: Mol2SpecSimple(molecule_dim=64, prop_dim=32,
    # hdim=128, n_layers=3) on a batch of 20 molecule vectors (exercises the
    # padded tail-tile path, since 20 is not a multiple of the row tile).
    N, D, H, P, L = 20, 64, 128, 32, 3
    key = jax.random.PRNGKey(0)
    k0, k1, k2, k3, k4, k5, k6 = jax.random.split(key, 7)

    x = jax.random.normal(k0, (N, D), dtype=jnp.float32)
    # Synthetic Linear parameters already in "math" (in, out) layout
    # (equivalent to torch_linear.weight.T), scaled ~1/sqrt(fan_in).
    w1s = jax.random.normal(k1, (L, D, H), dtype=jnp.float32) / jnp.sqrt(D)
    b1s = jax.random.normal(k2, (L, H), dtype=jnp.float32) * 0.01
    w2s = jax.random.normal(k3, (L, H, D), dtype=jnp.float32) / jnp.sqrt(H)
    b2s = jax.random.normal(k4, (L, D), dtype=jnp.float32) * 0.01
    wf = jax.random.normal(k5, (D, P), dtype=jnp.float32) / jnp.sqrt(D)
    bf = jax.random.normal(k6, (P,), dtype=jnp.float32) * 0.01

    out = mol2spec_forward(x, w1s, b1s, w2s, b2s, wf, bf)
    out = jax.block_until_ready(out)

    # Pure-JAX reference with identical (inference) semantics.
    h = x
    for l in range(L):
        z = h @ w1s[l] + b1s[l]
        z = z * jax.nn.sigmoid(z)          # SiLU
        h = h + (z @ w2s[l] + b2s[l])      # ResBlock
    ref = h @ wf + bf                      # final Linear(molecule_dim -> prop_dim)

    assert out.shape == (N, P)
    assert jnp.allclose(out, ref, atol=2e-2, rtol=2e-2), \
        float(jnp.max(jnp.abs(out - ref)))
    print("KERNEL_OK")
</pallas_src>

<mosaic_0001>
module attributes {stable_mosaic.version = 11 : i64} {
  func.func @mol2spec_kernel(%arg0: i32, %arg1: i32, %arg2: memref<24x64xf32, #tpu.memory_space<vmem>>, %arg3: memref<1x64x128xf32, #tpu.memory_space<vmem>>, %arg4: memref<1x1x128xf32, #tpu.memory_space<vmem>>, %arg5: memref<1x128x64xf32, #tpu.memory_space<vmem>>, %arg6: memref<1x1x64xf32, #tpu.memory_space<vmem>>, %arg7: memref<64x32xf32, #tpu.memory_space<vmem>>, %arg8: memref<1x32xf32, #tpu.memory_space<vmem>>, %arg9: memref<24x32xf32, #tpu.memory_space<vmem>>, %arg10: memref<24x64xf32, #tpu.memory_space<vmem>>) attributes {dimension_semantics = [#tpu.dimension_semantics<parallel>, #tpu.dimension_semantics<arbitrary>], iteration_bounds = array<i64: 1, 3>, scalar_prefetch = 0 : i64, scratch_operands = 1 : i64, tpu.core_type = #tpu.core_type<tc>, window_params = [{transform_indices = @transform_0, window_bounds = array<i64: 24, 64>}, {transform_indices = @transform_1, window_bounds = array<i64: 1, 64, 128>}, {transform_indices = @transform_2, window_bounds = array<i64: 1, 1, 128>}, {transform_indices = @transform_3, window_bounds = array<i64: 1, 128, 64>}, {transform_indices = @transform_4, window_bounds = array<i64: 1, 1, 64>}, {pipeline_mode = #tpu.pipeline_mode<synchronous>, transform_indices = @transform_5, window_bounds = array<i64: 64, 32>}, {pipeline_mode = #tpu.pipeline_mode<synchronous>, transform_indices = @transform_6, window_bounds = array<i64: 1, 32>}, {transform_indices = @transform_7, window_bounds = array<i64: 24, 32>}]} {
    %c0_i32 = arith.constant 0 : i32
    %0 = arith.cmpi eq, %arg1, %c0_i32 : i32
    %1 = arith.extui %0 : i1 to i32
    %c0_i32_0 = arith.constant 0 : i32
    %2 = arith.cmpi ne, %1, %c0_i32_0 : i32
    scf.if %2 {
      %c0_21 = arith.constant 0 : index
      %c0_22 = arith.constant 0 : index
      %31 = vector.load %arg2[%c0_21, %c0_22] : memref<24x64xf32, #tpu.memory_space<vmem>>, vector<24x64xf32>
      %c0_23 = arith.constant 0 : index
      %c0_24 = arith.constant 0 : index
      %32 = vector.load %arg10[%c0_23, %c0_24] : memref<24x64xf32, #tpu.memory_space<vmem>>, vector<24x64xf32>
      tpu.vector_store %arg10[%c0_23, %c0_24], %31 {strides = array<i32>} : memref<24x64xf32, #tpu.memory_space<vmem>>, vector<24x64xf32>,
    } else {
    }
    %c0 = arith.constant 0 : index
    %c0_1 = arith.constant 0 : index
    %3 = vector.load %arg10[%c0, %c0_1] : memref<24x64xf32, #tpu.memory_space<vmem>>, vector<24x64xf32>
    %c0_2 = arith.constant 0 : index
    %c0_3 = arith.constant 0 : index
    %c0_4 = arith.constant 0 : index
    %4 = vector.load %arg3[%c0_2, %c0_3, %c0_4] : memref<1x64x128xf32, #tpu.memory_space<vmem>>, vector<1x64x128xf32>
    %5 = vector.shape_cast %4 : vector<1x64x128xf32> to vector<64x128xf32>
    %cst = arith.constant dense<0.000000e+00> : vector<24x128xf32>
    %6 = tpu.matmul %3, %5, %cst {dimension_numbers = #tpu.dot_dimension_numbers<[1], [0], [0], [1], [0, 0, 1, 1], [], []>} : vector<24x64xf32>, vector<64x128xf32>, vector<24x128xf32> -> vector<24x128xf32>
    %c0_5 = arith.constant 0 : index
    %c0_6 = arith.constant 0 : index
    %c0_7 = arith.constant 0 : index
    %7 = vector.load %arg4[%c0_5, %c0_6, %c0_7] : memref<1x1x128xf32, #tpu.memory_space<vmem>>, vector<1x1x128xf32>
    %8 = vector.shape_cast %7 : vector<1x1x128xf32> to vector<1x128xf32>
    %9 = vector.broadcast %8 : vector<1x128xf32> to vector<24x128xf32>
    %10 = arith.addf %6, %9 : vector<24x128xf32>
    %cst_8 = arith.constant 0.000000e+00 : f32
    %11 = vector.broadcast %cst_8 : f32 to vector<24x128xf32>
    %12 = arith.subf %11, %10 : vector<24x128xf32>
    %13 = math.exp %12 : vector<24x128xf32>
    %cst_9 = arith.constant 1.000000e+00 : f32
    %14 = vector.broadcast %cst_9 : f32 to vector<24x128xf32>
    %15 = arith.addf %14, %13 : vector<24x128xf32>
    %cst_10 = arith.constant 1.000000e+00 : f32
    %16 = vector.broadcast %cst_10 : f32 to vector<24x128xf32>
    %17 = arith.divf %16, %15 : vector<24x128xf32>
    %18 = arith.mulf %10, %17 : vector<24x128xf32>
    %c0_11 = arith.constant 0 : index
    %c0_12 = arith.constant 0 : index
    %c0_13 = arith.constant 0 : index
    %19 = vector.load %arg5[%c0_11, %c0_12, %c0_13] : memref<1x128x64xf32, #tpu.memory_space<vmem>>, vector<1x128x64xf32>
    %20 = vector.shape_cast %19 : vector<1x128x64xf32> to vector<128x64xf32>
    %cst_14 = arith.constant dense<0.000000e+00> : vector<24x64xf32>
    %21 = tpu.matmul %18, %20, %cst_14 {dimension_numbers = #tpu.dot_dimension_numbers<[1], [0], [0], [1], [0, 0, 1, 1], [], []>} : vector<24x128xf32>, vector<128x64xf32>, vector<24x64xf32> -> vector<24x64xf32>
    %c0_15 = arith.constant 0 : index
    %c0_16 = arith.constant 0 : index
    %c0_17 = arith.constant 0 : index
    %22 = vector.load %arg6[%c0_15, %c0_16, %c0_17] : memref<1x1x64xf32, #tpu.memory_space<vmem>>, vector<1x1x64xf32>
    %23 = vector.shape_cast %22 : vector<1x1x64xf32> to vector<1x64xf32>
    %24 = vector.broadcast %23 : vector<1x64xf32> to vector<24x64xf32>
    %25 = arith.addf %21, %24 : vector<24x64xf32>
    %26 = arith.addf %3, %25 : vector<24x64xf32>
    %c0_18 = arith.constant 0 : index
    %c0_19 = arith.constant 0 : index
    %27 = vector.load %arg10[%c0_18, %c0_19] : memref<24x64xf32, #tpu.memory_space<vmem>>, vector<24x64xf32>
    tpu.vector_store %arg10[%c0_18, %c0_19], %26 {strides = array<i32>} : memref<24x64xf32, #tpu.memory_space<vmem>>, vector<24x64xf32>,
    %c2_i32 = arith.constant 2 : i32
    %28 = arith.cmpi eq, %arg1, %c2_i32 : i32
    %29 = arith.extui %28 : i1 to i32
    %c0_i32_20 = arith.constant 0 : i32
    %30 = arith.cmpi ne, %29, %c0_i32_20 : i32
    scf.if %30 {
      %c0_21 = arith.constant 0 : index
      %c0_22 = arith.constant 0 : index
      %31 = vector.load %arg10[%c0_21, %c0_22] : memref<24x64xf32, #tpu.memory_space<vmem>>, vector<24x64xf32>
      %c0_23 = arith.constant 0 : index
      %c0_24 = arith.constant 0 : index
      %32 = vector.load %arg7[%c0_23, %c0_24] : memref<64x32xf32, #tpu.memory_space<vmem>>, vector<64x32xf32>
      %cst_25 = arith.constant dense<0.000000e+00> : vector<24x32xf32>
      %33 = tpu.matmul %31, %32, %cst_25 {dimension_numbers = #tpu.dot_dimension_numbers<[1], [0], [0], [1], [0, 0, 1, 1], [], []>} : vector<24x64xf32>, vector<64x32xf32>, vector<24x32xf32> -> vector<24x32xf32>
      %c0_26 = arith.constant 0 : index
      %c0_27 = arith.constant 0 : index
      %34 = vector.load %arg8[%c0_26, %c0_27] : memref<1x32xf32, #tpu.memory_space<vmem>>, vector<1x32xf32>
      %35 = vector.broadcast %34 : vector<1x32xf32> to vector<24x32xf32>
      %36 = arith.addf %33, %35 : vector<24x32xf32>
      %c0_28 = arith.constant 0 : index
      %c0_29 = arith.constant 0 : index
      %37 = vector.load %arg9[%c0_28, %c0_29] : memref<24x32xf32, #tpu.memory_space<vmem>>, vector<24x32xf32>
      tpu.vector_store %arg9[%c0_28, %c0_29], %36 {strides = array<i32>} : memref<24x32xf32, #tpu.memory_space<vmem>>, vector<24x32xf32>,
    } else {
    }
    return
  }
  func.func @transform_0(%arg0: i32, %arg1: i32) -> (i32, i32) {
    %c0_i32 = arith.constant 0 : i32
    %c0_i32_0 = arith.constant 0 : i32
    return %arg0, %c0_i32 : i32, i32
  }
  func.func @transform_1(%arg0: i32, %arg1: i32) -> (i32, i32, i32) {
    %c0_i32 = arith.constant 0 : i32
    %c0_i32_0 = arith.constant 0 : i32
    %c0_i32_1 = arith.constant 0 : i32
    return %arg1, %c0_i32, %c0_i32_0 : i32, i32, i32
  }
  func.func @transform_2(%arg0: i32, %arg1: i32) -> (i32, i32, i32) {
    %c0_i32 = arith.constant 0 : i32
    %c0_i32_0 = arith.constant 0 : i32
    %c0_i32_1 = arith.constant 0 : i32
    return %arg1, %c0_i32, %c0_i32_0 : i32, i32, i32
  }
  func.func @transform_3(%arg0: i32, %arg1: i32) -> (i32, i32, i32) {
    %c0_i32 = arith.constant 0 : i32
    %c0_i32_0 = arith.constant 0 : i32
    %c0_i32_1 = arith.constant 0 : i32
    return %arg1, %c0_i32, %c0_i32_0 : i32, i32, i32
  }
  func.func @transform_4(%arg0: i32, %arg1: i32) -> (i32, i32, i32) {
    %c0_i32 = arith.constant 0 : i32
    %c0_i32_0 = arith.constant 0 : i32
    %c0_i32_1 = arith.constant 0 : i32
    return %arg1, %c0_i32, %c0_i32_0 : i32, i32, i32
  }
  func.func @transform_5(%arg0: i32, %arg1: i32) -> (i32, i32) {
    %c0_i32 = arith.constant 0 : i32
    %c0_i32_0 = arith.constant 0 : i32
    %c0_i32_1 = arith.constant 0 : i32
    return %c0_i32, %c0_i32_0 : i32, i32
  }
  func.func @transform_6(%arg0: i32, %arg1: i32) -> (i32, i32) {
    %c0_i32 = arith.constant 0 : i32
    %c0_i32_0 = arith.constant 0 : i32
    %c0_i32_1 = arith.constant 0 : i32
    return %c0_i32, %c0_i32_0 : i32, i32
  }
  func.func @transform_7(%arg0: i32, %arg1: i32) -> (i32, i32) {
    %c0_i32 = arith.constant 0 : i32
    %c0_i32_0 = arith.constant 0 : i32
    return %arg0, %c0_i32 : i32, i32
  }
}

</mosaic_0001>

<bundles_post_ra>
// kernel: tpu_custom_call.1
= control target key start
LH: loop header
LB: loop body
LE: loop exit
PB: predicated region body
PF: predicated region fallthrough
CT: control target
= control target key end

     0   :  { %12 = vsyncpa [#allocation4], 0  ;;  %s1192_s24 = smov 0   ;;  %s1194_s25 = smov 0   ;;  %s1394_s0 = inlined_call_operand.vmem [shape: f32[24,64], index: 0, kind: input, shape index: {}]   ;;  %s1395_s1 = inlined_call_operand.vmem [shape: f32[3,64,128], index: 1, kind: input, shape index: {}]   ;;  %s1396_s2 = inlined_call_operand.vmem [shape: f32[3,1,128], index: 2, kind: input, shape index: {}]   ;;  %s1397_s3 = inlined_call_operand.vmem [shape: f32[3,128,64], index: 3, kind: input, shape index: {}]   ;;  %s1398_s4 = inlined_call_operand.vmem [shape: f32[3,1,64], index: 4, kind: input, shape index: {}]   ;;  %s1399_s5 = inlined_call_operand.vmem [shape: f32[64,32], index: 5, kind: input, shape index: {}]   ;;  %s1400_s6 = inlined_call_operand.vmem [shape: f32[1,32], index: 6, kind: input, shape index: {}]   ;;  %s1401_s7 = inlined_call_operand.hbm [shape: f32[24,32], index: 7, kind: output, shape index: {}]  }
   0x1   :  { %s1196_s26 = smov 0  }
   0x2 LB: > { %s824_s27 = sadd.s32 4294967295, %s1141_s26   ;;  %s27_s28 = sadd.s32 1, %s1137_s25  ;;  %s1141_s26 = sphi %s1196_s26, %s18_s26   ;;  %s1137_s25 = sphi %s1194_s25, %s1404_s25   ;;  %s1133_s24 = sphi %s1192_s24, %s1403_s24  }
   0x3   : > { %p28_p0 = scmp.ge.s32.totalorder %s27_s28, 3  ;;  %p828_p1 = scmp.ge.s32.totalorder %s1141_s26, 1 }
   0x4   : > { %p287_p2 = scmp.lt.s32.totalorder %s1141_s26, 4 }
   0x5   : > { %s1406_s28 = smov (%p28_p0, %s27_s28), 0 }
   0x6   : > { %p288_p3 = pnand %p828_p1, %p287_p2 }
   0x7   : > { %p336_p4 = scmp.lt.s32.totalorder (!%p288_p3), %s1133_s24, 2  ;;  %p833_p5 = scmp.ne.s32.totalorder (!%p288_p3), %s1133_s24, 0 }
   0x8   : > { %291 = sbr.rel (%p288_p3) target bundleno = 769 (0x301), region = 48 }
   0xf   : > { %s1215_s29 = scalar_select %p336_p4, %s1133_s24, 2 }
  0x10   : > { %356 = sbr.rel (%p833_p5) target bundleno = 23 (0x17), region = 52  ;;  %v357_v0 = vld [vmem:[%s1394_s0] sm:$0xff] (!%p833_p5)  ;;  %vm360_vm0 = vcmask (!%p833_p5), 523264   ;;  %v358_v1 = vld [vmem:[%s1394_s0 + $0x8] sm:$0xff] (!%p833_p5)  ;;  %v359_v2 = vld [vmem:[%s1394_s0 + $0x10] sm:$0xff] (!%p833_p5) }
  0x11   : > { %s848_s30 = sshll.u32 %s1215_s29, 6  ;;  %s343_s10 = scalar_lea.vmem %s1396_s2, %s1215_s29  ;;  %361 = vst.msk [vmem:[#allocation2] sm:$0xff] (!%p833_p5), %vm360_vm0, %v357_v0  ;;  %362 = vst.msk [vmem:[#allocation2 + $0x8] sm:$0xff] (!%p833_p5), %vm360_vm0, %v358_v1 }
  0x12   : > { %s1225_s13 = scalar_lea.vmem %s1395_s1, %s848_s30  ;;  %s849_s14 = sshll.u32 %s1215_s29, 7  ;;  %363 = vst.msk [vmem:[#allocation2 + $0x10] sm:$0xff] (!%p833_p5), %vm360_vm0, %v359_v2 }
  0x13   : > { %s1231_s17 = scalar_lea.vmem %s1397_s3, %s849_s14  ;;  %s351_s20 = scalar_lea.vmem %s1398_s4, %s1215_s29 }
  0x17 PF: > { %v367_v3 = vld [vmem:[%s1225_s13] sm:$0xff]  ;;  %v368_v4 = vld [vmem:[%s1225_s13 + $0x8] sm:$0xff]  ;;  %v369_v5 = vld [vmem:[%s1225_s13 + $0x10] sm:$0xff]  ;;  %v1143_v6 = vmov 0.0|0.0   ;;  %vm1144_vm1 = vmmov 0   ;;  %v1145_v9 = vmov 0.0  }
  0x18   : > { %982 = vmatprep.subr.bf16.mxu0 %v1143_v6  ;;  %v983_v7 = vpack.c.bf16 %v368_v4, %v367_v3  ;;  %v370_v8 = vld [vmem:[%s1225_s13 + $0x18] sm:$0xff]  ;;  %907 = vmatprep.mubr.msk.f32.mxu0 %vm1144_vm1, %v1145_v9  ;;  %v371_v11 = vld [vmem:[%s1225_s13 + $0x20] sm:$0xff]  ;;  %v372_v12 = vld [vmem:[%s1225_s13 + $0x28] sm:$0xff]  ;;  %vm382_vm2 = vcmask 523264   ;;  %p839_p6 = scmp.ne.s32.totalorder %s1133_s24, 2 }
  0x19   : > { %994 = vmatprep.subr.bf16.mxu1 %v1143_v6  ;;  %948 = vmatprep.mubr.msk.f32.mxu1 %vm1144_vm1, %v1145_v9  ;;  %v986_v10 = vpack.c.bf16 %v370_v8, %v369_v5  ;;  %v989_v13 = vpack.c.bf16 %v372_v12, %v371_v11  ;;  %v373_v14 = vld [vmem:[%s1225_s13 + $0x30] sm:$0xff]  ;;  %v374_v15 = vld [vmem:[%s1225_s13 + $0x38] sm:$0xff]  ;;  %v1264_v17 = vld [vmem:[#allocation2] sm:$0xff]  ;;  %vm1147_vm3 = vmmov (!%p839_p6), 0   ;;  %vm713_vm4 = vcmask (!%p839_p6), 261120  }
  0x1a   : > { %984 = vmatpush3.bf16.msra.mxu0 %v983_v7  ;;  %v992_v16 = vpack.c.bf16 %v374_v15, %v373_v14  ;;  %v1270_v18 = vld [vmem:[#allocation2 + $0x8] sm:$0xff]  ;;  %v1276_v19 = vld [vmem:[#allocation2 + $0x10] sm:$0xff]  ;;  %v493_v20 = vld [vmem:[%s1231_s17] sm:$0xff] }
  0x1b   : > { %985 = vmatprep.subr.bf16.mxu0 %v1143_v6  ;;  %v494_v21 = vld [vmem:[%s1231_s17 + $0x8] sm:$0xff]  ;;  %v495_v23 = vld [vmem:[%s1231_s17 + $0x10] sm:$0xff]  ;;  %v496_v24 = vld [vmem:[%s1231_s17 + $0x18] sm:$0xff] }
  0x1c   : > { %v995_v22 = vpack.c.bf16 %v494_v21, %v493_v20  ;;  %v998_v25 = vpack.c.bf16 %v496_v24, %v495_v23  ;;  %v497_v26 = vld [vmem:[%s1231_s17 + $0x20] sm:$0xff]  ;;  %v498_v27 = vld [vmem:[%s1231_s17 + $0x28] sm:$0xff]  ;;  %v499_v29 = vld [vmem:[%s1231_s17 + $0x30] sm:$0xff] }
  0x1d   : > { %v1001_v28 = vpack.c.bf16 %v498_v27, %v497_v26  ;;  %v500_v30 = vld [vmem:[%s1231_s17 + $0x38] sm:$0xff]  ;;  %v501_v32 = vld [vmem:[%s1231_s17 + $0x40] sm:$0xff]  ;;  %v502_v33 = vld [vmem:[%s1231_s17 + $0x48] sm:$0xff]  ;;  %v1148_v27 = vmov (!%p839_p6), 0.0  }
  0x1e   : > { %987 = vmatpush3.bf16.msra.mxu0 %v986_v10  ;;  %996 = vmatpush3.bf16.msra.mxu1 %v995_v22  ;;  %v1004_v31 = vpack.c.bf16 %v500_v30, %v499_v29  ;;  %v1007_v34 = vpack.c.bf16 %v502_v33, %v501_v32  ;;  %v503_v35 = vld [vmem:[%s1231_s17 + $0x50] sm:$0xff]  ;;  %v504_v36 = vld [vmem:[%s1231_s17 + $0x58] sm:$0xff]  ;;  %v505_v38 = vld [vmem:[%s1231_s17 + $0x60] sm:$0xff] }
  0x1f   : > { %988 = vmatprep.subr.bf16.mxu0 %v1143_v6  ;;  %997 = vmatprep.subr.bf16.mxu1 %v1143_v6  ;;  %v1010_v37 = vpack.c.bf16 %v504_v36, %v503_v35  ;;  %v506_v39 = vld [vmem:[%s1231_s17 + $0x68] sm:$0xff]  ;;  %v507_v41 = vld [vmem:[%s1231_s17 + $0x70] sm:$0xff]  ;;  %v508_v42 = vld [vmem:[%s1231_s17 + $0x78] sm:$0xff] }
  0x20   : > { %v1013_v40 = vpack.c.bf16 %v506_v39, %v505_v38  ;;  %v1016_v43 = vpack.c.bf16 %v508_v42, %v507_v41  ;;  %v834_v44 = vld [vmem:[%s343_s10] ss:$0 sm:$0xff]  ;;  %v611_v24 = vld [vmem:[%s1399_s5 + $0x10] sm:$0xff] (!%p839_p6)  ;;  %v612_v26 = vld [vmem:[%s1399_s5 + $0x18] sm:$0xff] (!%p839_p6) }
  0x21   : > { %v838_v8 = vld [vmem:[%s351_s20] ss:$0 sm:$0xff]  ;;  %v614_v30 = vld [vmem:[%s1399_s5 + $0x28] sm:$0xff] (!%p839_p6)  ;;  %v615_v32 = vld [vmem:[%s1399_s5 + $0x30] sm:$0xff] (!%p839_p6) }
  0x22   : > { %990 = vmatpush3.bf16.msra.mxu0 %v989_v13  ;;  %999 = vmatpush3.bf16.msra.mxu1 %v998_v25  ;;  %v1146_v25 = vmov (!%p839_p6), 0.0|0.0   ;;  %v613_v29 = vld [vmem:[%s1399_s5 + $0x20] sm:$0xff] (!%p839_p6)  ;;  %v616_v33 = vld [vmem:[%s1399_s5 + $0x38] sm:$0xff] (!%p839_p6) }
  0x23   : > { %991 = vmatprep.subr.bf16.mxu0 %v1143_v6  ;;  %1000 = vmatprep.subr.bf16.mxu1 %v1143_v6  ;;  %v840_v38 = vld [vmem:[%s1400_s6] ss:$0 sm:$0xff] (!%p839_p6) }
  0x26   : > { %993 = vmatpush3.bf16.msra.mxu0 %v992_v16  ;;  %1002 = vmatpush3.bf16.msra.mxu1 %v1001_v28  ;;  %v1022_v28 = vpack.c.bf16 (!%p839_p6), %v612_v26, %v611_v24 }
  0x27   : > { %1003 = vmatprep.subr.bf16.mxu1 %v1143_v6  ;;  %1018 = vmatprep.subr.bf16.mxu0 (!%p839_p6), %v1146_v25 }
  0x29   : > { %908 = vmatmul.mubr.msk.f32.vlgmr.msra.gmra.mrb[0].mxu0 %vm382_vm2, %v1264_v17 }
  0x2a   : > { %910 = vmatprep.mubr.msk.f32.mxu0 %vm1144_vm1, %v1145_v9  ;;  %1005 = vmatpush3.bf16.msra.mxu1 %v1004_v31  ;;  %v1025_v31 = vpack.c.bf16 (!%p839_p6), %v614_v30, %v613_v29 }
  0x2b   : > { %1006 = vmatprep.subr.bf16.mxu1 %v1143_v6 }
  0x2d   : > { %911 = vmatmul.mubr.msk.f32.gmra.mrb[2].mxu0 %vm382_vm2, %v1270_v18 }
  0x2e   : > { %913 = vmatprep.mubr.msk.f32.mxu0 %vm1144_vm1, %v1145_v9  ;;  %1008 = vmatpush3.bf16.msra.mxu1 %v1007_v34  ;;  %v1028_v34 = vpack.c.bf16 (!%p839_p6), %v616_v33, %v615_v32 }
  0x2f   : > { %1009 = vmatprep.subr.bf16.mxu1 %v1143_v6 }
  0x31   : > { %914 = vmatmul.mubr.msk.f32.gmra.mrb[4].mxu0 %vm382_vm2, %v1276_v19 }
  0x32   : > { %1011 = vmatpush3.bf16.msra.mxu1 %v1010_v37  ;;  %973 = vmatprep.mubr.msk.f32.mxu0 (!%p839_p6), %vm1147_vm3, %v1148_v27 }
  0x33   : > { %1012 = vmatprep.subr.bf16.mxu1 %v1143_v6 }
  0x36   : > { %1014 = vmatpush3.bf16.msra.mxu1 %v1013_v40 }
  0x37   : > { %1015 = vmatprep.subr.bf16.mxu1 %v1143_v6 }
  0x3a   : > { %1017 = vmatpush3.bf16.msra.mxu1 %v1016_v43 }
  0x3b   : > { %1030 = vmatprep.subr.bf16.mxu1 (!%p839_p6), %v1146_v25 }
  0xfc   : > { %v458_v45 = vpop.f32.mrb[0].mxu0 }
  0xfd   : > { %v459_v46 = vadd.f32 %v834_v44, %v458_v45  ;;  %v909_v47 = vpop.f32.mrb[1].mxu0 }
  0xff   : > { %v472_v48 = vsub.f32 0.0, %v459_v46 }
 0x100   : > { %v463_v49 = vpop.f32.mrb[2].mxu0 }
 0x101   : > { %v475_v50 = vmul.f32 1.442695, %v472_v48  ;;  %v464_v51 = vadd.f32 %v834_v44, %v463_v49  ;;  %v912_v52 = vpop.f32.mrb[3].mxu0 }
 0x103   : > { %1077 = vpow2.f32 %v475_v50  ;;  %v473_v53 = vsub.f32 0.0, %v464_v51 }
 0x104   : > { %v468_v54 = vpop.f32.mrb[4].mxu0 }
 0x105   : > { %v477_v55 = vmul.f32 1.442695, %v473_v53  ;;  %v469_v56 = vadd.f32 %v834_v44, %v468_v54  ;;  %v915_v57 = vpop.f32.mrb[5].mxu0 }
 0x107   : > { %1079 = vpow2.f32 %v477_v55  ;;  %v474_v58 = vsub.f32 0.0, %v469_v56 }
 0x109   : > { %v479_v59 = vmul.f32 1.442695, %v474_v58 }
 0x10b   : > { %1081 = vpow2.f32 %v479_v59 }
 0x10d   : > { %v1078_v60 = vpop.eup %1077 }
 0x10e   : > { %v481_v61 = vadd.f32 1.0, %v1078_v60 }
 0x110   : > { %1083 = vrcp.f32 %v481_v61 }
 0x111   : > { %v1080_v62 = vpop.eup %1079 }
 0x112   : > { %v482_v63 = vadd.f32 1.0, %v1080_v62 }
 0x114   : > { %1085 = vrcp.f32 %v482_v63 }
 0x115   : > { %v1082_v0 = vpop.eup %1081 }
 0x116   : > { %v483_v1 = vadd.f32 1.0, %v1082_v0 }
 0x118   : > { %1087 = vrcp.f32 %v483_v1 }
 0x11a   : > { %v1084_v2 = vpop.eup %1083 }
 0x11b   : > { %v490_v3 = vmul.f32 %v1084_v2, %v459_v46 }
 0x11d   : > { %949 = vmatmul.mubr.f32.vlgmr.msra.gmra.mrb[0].mxu1 %v490_v3 }
 0x11e   : > { %v1086_v4 = vpop.eup %1085  ;;  %951 = vmatprep.mubr.msk.f32.mxu1 %vm1144_vm1, %v1145_v9 }
 0x11f   : > { %v491_v5 = vmul.f32 %v1086_v4, %v464_v51 }
 0x121   : > { %952 = vmatmul.mubr.f32.gmra.mrb[2].mxu1 %v491_v5 }
 0x122   : > { %v1088_v6 = vpop.eup %1087  ;;  %954 = vmatprep.mubr.msk.f32.mxu1 %vm1144_vm1, %v1145_v9 }
 0x123   : > { %v492_v7 = vmul.f32 %v1088_v6, %v469_v56 }
 0x125   : > { %955 = vmatmul.mubr.f32.gmra.mrb[4].mxu1 %v492_v7 }
 0x126   : > { %976 = vmatprep.mubr.msk.f32.mxu1 (!%p839_p6), %vm1147_vm3, %v1148_v27 }
 0x1f0   : > { %v582_v10 = vpop.f32.mrb[0].mxu1 }
 0x1f1   : > { %v583_v11 = vadd.f32 %v838_v8, %v582_v10  ;;  %v950_v12 = vpop.f32.mrb[1].mxu1 }
 0x1f3   : > { %v596_v13 = vadd.f32 %v583_v11, %v1264_v17  ;;  %v609_v17 = vld [vmem:[%s1399_s5] sm:$0xff] (!%p839_p6) }
 0x1f4   : > { %v587_v14 = vpop.f32.mrb[2].mxu1 }
 0x1f5   : > { %599 = vst.msk [vmem:[#allocation2] sm:$0xff] %vm382_vm2, %v596_v13  ;;  %v588_v15 = vadd.f32 %v838_v8, %v587_v14  ;;  %v953_v16 = vpop.f32.mrb[3].mxu1 }
 0x1f7   : > { %v597_v20 = vadd.f32 %v588_v15, %v1270_v18  ;;  %605 = sbr.rel (%p839_p6) target bundleno = 743 (0x2e7), region = 56  ;;  %v610_v18 = vld [vmem:[%s1399_s5 + $0x8] sm:$0xff] (!%p839_p6) }
 0x1f8   : > { %v592_v9 = vpop.f32.mrb[4].mxu1 }
 0x1f9   : > { %600 = vst.msk [vmem:[#allocation2 + $0x8] sm:$0xff] %vm382_vm2, %v597_v20  ;;  %v593_v21 = vadd.f32 %v838_v8, %v592_v9  ;;  %v956_v22 = vpop.f32.mrb[5].mxu1 }
 0x1fb   : > { %v598_v23 = vadd.f32 %v593_v21, %v1276_v19  ;;  %v1019_v19 = vpack.c.bf16 (!%p839_p6), %v610_v18, %v609_v17 }
 0x1fc   : > { %v606_v36 = vld [vmem:[#allocation2] sm:$0xff] (!%p839_p6) }
 0x1fd   : > { %601 = vst.msk [vmem:[#allocation2 + $0x10] sm:$0xff] %vm382_vm2, %v598_v23  ;;  %1034 = vmatpush3.bf16.msra.mxu1 (!%p839_p6), %v1019_v19  ;;  %1020 = vmatpush3.bf16.msra.mxu0 (!%p839_p6), %v1019_v19 }
 0x1fe   : > { %1031 = vmatprep.subr.bf16.mxu1 %v1146_v25  ;;  %1021 = vmatprep.subr.bf16.mxu0 %v1146_v25 }
 0x200   : > { %v607_v35 = vld [vmem:[#allocation2 + $0x8] sm:$0xff] }
 0x201   : > { %1035 = vmatpush3.bf16.msra.mxu1 %v1022_v28  ;;  %1023 = vmatpush3.bf16.msra.mxu0 %v1022_v28 }
 0x202   : > { %1032 = vmatprep.subr.bf16.mxu1 %v1146_v25  ;;  %1024 = vmatprep.subr.bf16.mxu0 %v1146_v25 }
 0x204   : > { %v608_v37 = vld [vmem:[#allocation2 + $0x10] sm:$0xff] }
 0x205   : > { %1036 = vmatpush3.bf16.msra.mxu1 %v1025_v31  ;;  %1026 = vmatpush3.bf16.msra.mxu0 %v1025_v31 }
 0x206   : > { %1033 = vmatprep.subr.bf16.mxu1 %v1146_v25  ;;  %1027 = vmatprep.subr.bf16.mxu0 %v1146_v25 }
 0x209   : > { %1037 = vmatpush3.bf16.msra.mxu1 %v1028_v34  ;;  %1029 = vmatpush3.bf16.msra.mxu0 %v1028_v34 }
 0x20c   : > { %977 = vmatmul.mubr.msk.f32.vlgmr.msra.gmra.mrb[0].mxu1 %vm382_vm2, %v607_v35  ;;  %974 = vmatmul.mubr.msk.f32.vlgmr.msra.gmra.mrb[0].mxu0 %vm382_vm2, %v606_v36 }
 0x20d   : > { %979 = vmatprep.mubr.msk.f32.mxu1 %vm1147_vm3, %v1148_v27 }
 0x210   : > { %980 = vmatmul.mubr.msk.f32.gmra.mrb[2].mxu1 %vm382_vm2, %v608_v37 }
 0x2df   : > { %v704_v39 = vpop.f32.mrb[0].mxu1  ;;  %v699_v40 = vpop.f32.mrb[0].mxu0 }
 0x2e0   : > { %v705_v41 = vadd.f32 %v840_v38, %v704_v39  ;;  %v978_v42 = vpop.f32.mrb[1].mxu1  ;;  %v700_v43 = vadd.f32 %v840_v38, %v699_v40  ;;  %v975_v44 = vpop.f32.mrb[1].mxu0 }
 0x2e2   : > { %715 = vst.msk [vmem:[#allocation3 + $0x8] sm:$0xff] %vm713_vm4, %v705_v41  ;;  %714 = vst.msk [vmem:[#allocation3] sm:$0xff] %vm713_vm4, %v700_v43 }
 0x2e3   : > { %v709_v45 = vpop.f32.mrb[2].mxu1 }
 0x2e4   : > { %v710_v46 = vadd.f32 %v840_v38, %v709_v45  ;;  %v981_v47 = vpop.f32.mrb[3].mxu1 }
 0x2e6   : > { %716 = vst.msk [vmem:[#allocation3 + $0x10] sm:$0xff] %vm713_vm4, %v710_v46 }
 0x2e7 PF: > { %p1359_p7 = scmp.eq.s32.totalorder %s824_s27, 2  ;;  %s1149_s29 = smov [#allocation3]  }
 0x2e8   : > { %s726_s14 = sshll.u32 %s1149_s29, 4  ;;  %s727_s14 = int_to_ptr.vmem [resolvable:$true] %s726_s14 }
 0x2e9   : > { %s1089_s15 = scalar_lea.vmem %s727_s14, 384  ;;  %p1096_p11 = scmp.lt.s32.totalorder %s727_s14, %s727_s14 }
 0x2ea   : > { %p1090_p8 = scmp.ne.s32.totalorder %s727_s14, %s1089_s15  ;;  %p1097_p12 = scmp.lt.s32.totalorder %s1089_s15, %s1089_s15 }
 0x2ec   : > { %p1091_p9 = pnand %p1090_p8, %p1359_p7  ;;  %p1098_p13 = por %p1097_p12, %p1096_p11 }
 0x2ee   : > { %p1092_p10 = pneg %p1091_p9 }
 0x2f0   : > { %p1099_p0 = pnand %p1098_p13, %p1092_p10 }
 0x2f2   : > { %1102 = shalt.err (!%p1099_p0)
}
 0x2f3   : > { %s1103_s27 = scalar_lea.hbm %s1401_s7, 384 }
 0x2f4   : > { %p1104_p1 = scmp.ne.s32.totalorder %s1401_s7, %s1103_s27  ;;  %p1109_p4 = scmp.lt.u32.totalorder %s1103_s27, %s1401_s7 }
 0x2f6   : > { %p1105_p2 = pnand %p1104_p1, %p1359_p7 }
 0x2f8   : > { %p1106_p3 = pneg %p1105_p2 }
 0x2fa   : > { %p1111_p5 = pnand %p1109_p4, %p1106_p3 }
 0x2fc   : > { %1114 = shalt.err (!%p1111_p5)
}
 0x2fd   : > { %s1150_s21 = smov 128   ;;  %s1151_s22 = smov 8  }
 0x2fe   : > { %1039 = dma.vmem_to_hbm [thread:$0]  (%p1359_p7), %s727_s14, 384, %s1401_s7, [#allocation4], %s1150_s21, %s1150_s21, %s1151_s22  }
 0x2ff   : > { %1128 = dma.done.wait (%p1359_p7), [#allocation4], 384  }
 0x300   : > { %1130 = vsyncadd (%p1359_p7), [#allocation4], 4294966912 }
 0x301 PF: > { %s18_s26 = sadd.s32 1, %s1141_s26   ;;  %s1403_s24 = smov %s1137_s25 }
 0x302   : > { %p15_p6 = scmp.ge.s32.totalorder %s18_s26, 5   ;;  %s1404_s25 = smov %s1406_s28 }
 0x304   :  { %17 = sbr.rel (!%p15_p6) target bundleno = 2 (0x2), region = 96 }
 0x30b   :  { %742 = vsyncpa [#allocation4], 1 }
 0x30c   :  { %744 = vsyncpa [#allocation4 + $0x1], 1 }

</bundles_post_ra>
